<compile_context>
chip_gen: v7x
topology: tpu7x:2x2x1
jax: 0.10.0
libtpu: 0.0.40
codegen_flags: <defaults>
</compile_context>

<pallas_src>
import numpy as np
import jax
import jax.numpy as jnp
from jax.experimental import pallas as pl
from jax.experimental.pallas import tpu as pltpu  # noqa: F401  (TPU backend)

MINIMAL_STD = 0.001
INIT_STD = 1.0


# ------------------------------ small helpers -------------------------------

def inverse_softplus(x):
    return float(np.log(np.expm1(x)))


def fill_triangular_map(n):
    """tfp-style fill_triangular placement: tri[r, c] = flat index landing at
    matrix position (r, c) for r >= c."""
    m = n * (n + 1) // 2
    idx = np.arange(m)
    x_tail = idx[(m - (n * n - m)):]
    xc = np.concatenate([x_tail, idx[::-1]]).reshape(n, n)
    return xc


def linear_params(key, fan_in, fan_out, zero_bias=False):
    """PyTorch nn.Linear-style init, stored as (in, out)."""
    bound = 1.0 / np.sqrt(fan_in)
    k1, k2 = jax.random.split(key)
    w = np.asarray(jax.random.uniform(k1, (fan_in, fan_out), jnp.float32,
                                      -bound, bound))
    if zero_bias:
        b = np.zeros((fan_out,), np.float32)
    else:
        b = np.asarray(jax.random.uniform(k2, (fan_out,), jnp.float32,
                                          -bound, bound))
    return w, b


# ------------------------------- Pallas kernel ------------------------------

def make_fused_kernel(num_hidden, shift, minimal_std):
    """Single fused kernel: merged block-diag MLP + masked log_softmax +
    softplus diag bijector, one (B, OUT) unmasked store.

    refs (num_hidden > 0): x, w0, whid(L-1,W,W), whead(W,OUT),
                           b_layers(L,1,W), misc(3,1,OUT), out(B,OUT)
    misc rows: [0]=head bias, [1]=chol-diag lane mask, [2]=gate lane mask.
    """
    def kernel(*refs):
        if num_hidden > 0:
            x_ref, w0_ref, whid_ref, whead_ref, bl_ref, misc_ref, out_ref = refs
        else:
            x_ref, w0_ref, whead_ref, bl_ref, misc_ref, out_ref = refs
            whid_ref = None

        x = x_ref[...]                                          # (B, C)

        # merged block-diagonal MLP (gate stack || K gaussian stacks)
        h = jnp.maximum(
            jnp.dot(x, w0_ref[...], preferred_element_type=jnp.float32)
            + bl_ref[0], 0.0)
        for l in range(num_hidden):                             # static unroll
            h = jnp.maximum(
                jnp.dot(h, whid_ref[l], preferred_element_type=jnp.float32)
                + bl_ref[l + 1], 0.0)

        # merged head: [gate logits | K x (mean | row-major lower-tri chol) | 0 pad]
        slab = jnp.dot(h, whead_ref[...],
                       preferred_element_type=jnp.float32) + misc_ref[0]

        diag_m = misc_ref[1]                                    # (1, OUT)
        gate_m = misc_ref[2]                                    # (1, OUT)

        # masked log_softmax over the K gate lanes only
        logits = jnp.where(gate_m > 0.5, slab, -jnp.inf)
        mx = jnp.max(logits, axis=-1, keepdims=True)
        z = logits - mx
        denom = jnp.sum(jnp.exp(z), axis=-1, keepdims=True)
        log_gates = z - jnp.log(denom)

        # softplus diag bijector on the chol-diagonal lanes (EUP-slot work)
        v = slab + shift
        softplus_v = jnp.maximum(v, 0.0) + jnp.log1p(jnp.exp(-jnp.abs(v)))
        out = jnp.where(diag_m > 0.5, softplus_v + minimal_std, slab)
        out = jnp.where(gate_m > 0.5, log_gates, out)

        out_ref[...] = out                                      # full unmasked store
    return kernel


# ------------------------- parameter init + packing -------------------------

def init_conditional_gmm(key, *, context_dim, n_components, dim,
                         num_gate_layer, num_neuron_gate_layer,
                         num_component_layer, num_neuron_component_layer,
                         random_init, init_scale, init_bias_gate=None,
                         out_lanes=128):
    K, Hg, H, C, D = (n_components, num_neuron_gate_layer,
                      num_neuron_component_layer, context_dim, dim)
    chol_dim = D * (D + 1) // 2
    head_out = D + D * D                  # mean | row-major (D,D) chol per component
    W = Hg + K * H                        # merged hidden width (160 in the demo)
    assert K + K * head_out <= out_lanes

    L_gate = max(1, num_gate_layer)
    L_comp = max(1, num_component_layer)
    L = max(L_gate, L_comp)               # shorter stack identity-padded (post-ReLU safe)

    keys = iter(jax.random.split(key, 128))

    # ---- raw per-network parameters ----
    gate_layers = [linear_params(next(keys), C if l == 0 else Hg, Hg)
                   for l in range(L_gate)]
    wg, bg = linear_params(next(keys), Hg, K)
    if init_bias_gate is not None:
        bg = np.asarray(init_bias_gate, np.float32)

    gauss_layers, gauss_mean, gauss_chol = [], [], []
    for _ in range(K):
        gauss_layers.append([linear_params(next(keys), C if l == 0 else H, H)
                             for l in range(L_comp)])
        gauss_mean.append(linear_params(next(keys), H, D, zero_bias=True))  # init_bias_mean = 0
        gauss_chol.append(linear_params(next(keys), H, chol_dim))

    if random_init:
        mean_bias = np.asarray(
            2.0 * init_scale * jax.random.uniform(next(keys), (K, D)) - init_scale,
            np.float32)
    else:
        mean_bias = np.zeros((K, D), np.float32)
    chol_bias = np.zeros((K, D, D), np.float32)   # module always inits this to zero

    # ---- fill_triangular folded into the head: flat chol -> row-major D*D ----
    tri = fill_triangular_map(D)
    scatter = np.zeros((chol_dim, D * D), np.float32)
    for r in range(D):
        for c in range(r + 1):
            scatter[tri[r, c], r * D + c] = 1.0

    # ---- layer 0: (C, W) ----
    w0 = np.zeros((C, W), np.float32)
    b_layers = np.zeros((L, 1, W), np.float32)
    w0[:, :Hg] = gate_layers[0][0]
    b_layers[0, 0, :Hg] = gate_layers[0][1]
    for k in range(K):
        sl = slice(Hg + k * H, Hg + (k + 1) * H)
        w0[:, sl] = gauss_layers[k][0][0]
        b_layers[0, 0, sl] = gauss_layers[k][0][1]

    # ---- hidden layers 1..L-1: block-diagonal (W, W), identity-padded ----
    whid = np.zeros((max(L - 1, 0), W, W), np.float32)
    for l in range(1, L):
        if l < L_gate:
            wl, bl = gate_layers[l]
        else:
            wl, bl = np.eye(Hg, dtype=np.float32), np.zeros((Hg,), np.float32)
        whid[l - 1, :Hg, :Hg] = wl
        b_layers[l, 0, :Hg] = bl
        for k in range(K):
            if l < L_comp:
                wl, bl = gauss_layers[k][l]
            else:
                wl, bl = np.eye(H, dtype=np.float32), np.zeros((H,), np.float32)
            sl = slice(Hg + k * H, Hg + (k + 1) * H)
            whid[l - 1, sl, sl] = wl
            b_layers[l, 0, sl] = bl

    # ---- merged head: (W, out_lanes) ----
    whead = np.zeros((W, out_lanes), np.float32)
    bhead = np.zeros((out_lanes,), np.float32)
    whead[:Hg, :K] = wg
    bhead[:K] = bg
    for k in range(K):
        rows = slice(Hg + k * H, Hg + (k + 1) * H)
        off = K + k * head_out
        wm, bm = gauss_mean[k]
        wc, bc = gauss_chol[k]
        whead[rows, off:off + D] = wm
        bhead[off:off + D] = bm + mean_bias[k]          # embedded_mean_bias folded in
        whead[rows, off + D:off + head_out] = wc @ scatter
        bhead[off + D:off + head_out] = bc @ scatter

    # ---- lane masks, packed with the head bias into one misc operand ----
    diag_mask = np.zeros((out_lanes,), np.float32)
    gate_mask = np.zeros((out_lanes,), np.float32)
    gate_mask[:K] = 1.0
    for k in range(K):
        base = K + k * head_out + D
        for i in range(D):
            diag_mask[base + i * (D + 1)] = 1.0
    misc = np.stack([bhead, diag_mask, gate_mask])[:, None, :]   # (3, 1, OUT)

    packed = dict(
        w0=jnp.asarray(w0), whid=jnp.asarray(whid), whead=jnp.asarray(whead),
        b_layers=jnp.asarray(b_layers), misc=jnp.asarray(misc),
        embedded_chol_bias=jnp.asarray(chol_bias))
    raw = dict(gate_layers=gate_layers, wg=wg, bg=bg,
               gauss_layers=gauss_layers, gauss_mean=gauss_mean,
               gauss_chol=gauss_chol, mean_bias=mean_bias, chol_bias=chol_bias)
    cfg = dict(dim=D, n_components=K, head_out=head_out, out_lanes=out_lanes,
               num_hidden=L - 1, has_chol_bias=bool(np.any(chol_bias)))
    return packed, raw, cfg


# -------------------------------- forward -----------------------------------

def build_forward(cfg):
    D, K = cfg["dim"], cfg["n_components"]
    head_out, out_lanes = cfg["head_out"], cfg["out_lanes"]
    num_hidden = cfg["num_hidden"]
    has_chol_bias = cfg["has_chol_bias"]

    shift = inverse_softplus(INIT_STD - MINIMAL_STD)
    kernel = make_fused_kernel(num_hidden, shift, MINIMAL_STD)

    @jax.jit
    def forward(packed, x):
        B = x.shape[0]
        args = [x, packed["w0"]]
        if num_hidden > 0:
            args.append(packed["whid"])
        args += [packed["whead"], packed["b_layers"], packed["misc"]]

        # Single grid-less pallas_call: every operand is a whole-array VMEM block
        # (total < 200 KiB), one lane-dense (B, 128) f32 output slab.
        slab = pl.pallas_call(
            kernel,
            out_shape=jax.ShapeDtypeStruct((B, out_lanes), jnp.float32),
        )(*args)

        # layout-only glue (fused by XLA under the same jit)
        log_gates = slab[:, :K]
        head = slab[:, K:K + K * head_out].reshape(B, K, head_out)
        active_means = head[..., :D]
        active_chols = head[..., D:].reshape(B, K, D, D)
        if has_chol_bias:   # embedded_chol_bias is identically zero at init
            active_chols = active_chols + packed["embedded_chol_bias"]
        return log_gates, active_means, active_chols

    return forward


# --------------------------- pure-numpy reference ---------------------------

def reference_forward(raw, x, dim, n_components):
    x = np.asarray(x, np.float32)
    B, D, K = x.shape[0], dim, n_components
    shift = inverse_softplus(INIT_STD - MINIMAL_STD)

    h = x
    for w, b in raw["gate_layers"]:
        h = np.maximum(h @ w + b, 0.0)
    logits = h @ raw["wg"] + raw["bg"]
    z = logits - logits.max(-1, keepdims=True)
    log_gates = z - np.log(np.exp(z).sum(-1, keepdims=True))

    tri = fill_triangular_map(D)
    means, chols = [], []
    for k in range(K):
        g = x
        for w, b in raw["gauss_layers"][k]:
            g = np.maximum(g @ w + b, 0.0)
        wm, bm = raw["gauss_mean"][k]
        wc, bc = raw["gauss_chol"][k]
        mean = g @ wm + bm
        flat = g @ wc + bc
        mat = np.zeros((B, D, D), np.float32)
        for r in range(D):
            for c in range(r + 1):
                mat[:, r, c] = flat[:, tri[r, c]]
        for i in range(D):
            v = mat[:, i, i] + shift
            mat[:, i, i] = (np.maximum(v, 0.0) + np.log1p(np.exp(-np.abs(v)))
                            + MINIMAL_STD)
        means.append(mean)
        chols.append(mat)
    active_means = np.stack(means, 1) + raw["mean_bias"]
    active_chols = np.stack(chols, 1) + raw["chol_bias"]
    return log_gates, active_means, active_chols


# ---------------------------------- main -------------------------------------

if __name__ == "__main__":
    key = jax.random.PRNGKey(0)
    k_param, k_x = jax.random.split(key)

    B, context_dim, n_components, dim = 16, 8, 4, 3
    packed, raw, cfg = init_conditional_gmm(
        k_param,
        context_dim=context_dim, n_components=n_components, dim=dim,
        num_gate_layer=2, num_neuron_gate_layer=32,
        num_component_layer=2, num_neuron_component_layer=32,   # Hg + K*H = 160
        random_init=True, init_scale=0.5,
        init_bias_gate=[0.0] * n_components)

    forward = build_forward(cfg)
    x = jax.random.normal(k_x, (B, context_dim), jnp.float32)

    log_gates, active_means, active_chols = forward(packed, x)
    jax.block_until_ready((log_gates, active_means, active_chols))

    # shape / semantic sanity checks
    assert log_gates.shape == (B, n_components)
    assert active_means.shape == (B, n_components, dim)
    assert active_chols.shape == (B, n_components, dim, dim)
    assert np.allclose(np.exp(np.asarray(log_gates)).sum(-1), 1.0, atol=1e-5)
    assert np.all(np.triu(np.asarray(active_chols), k=1) == 0.0)
    assert np.all(np.diagonal(np.asarray(active_chols), axis1=-2, axis2=-1) > 0.0)

    # pure-numpy reference of the original module math
    ref_lg, ref_m, ref_c = reference_forward(raw, x, dim, n_components)
    np.testing.assert_allclose(np.asarray(log_gates), ref_lg, rtol=1e-3, atol=1e-4)
    np.testing.assert_allclose(np.asarray(active_means), ref_m, rtol=1e-3, atol=1e-4)
    np.testing.assert_allclose(np.asarray(active_chols), ref_c, rtol=1e-3, atol=1e-4)

    print("KERNEL_OK")
</pallas_src>

<mosaic_0001>
module attributes {stable_mosaic.version = 11 : i64} {
  func.func @kernel(%arg0: memref<16x8xf32, #tpu.memory_space<vmem>>, %arg1: memref<8x160xf32, #tpu.memory_space<vmem>>, %arg2: memref<1x160x160xf32, #tpu.memory_space<vmem>>, %arg3: memref<160x128xf32, #tpu.memory_space<vmem>>, %arg4: memref<2x1x160xf32, #tpu.memory_space<vmem>>, %arg5: memref<3x1x128xf32, #tpu.memory_space<vmem>>, %arg6: memref<16x128xf32, #tpu.memory_space<vmem>>) attributes {dimension_semantics = [], scalar_prefetch = 0 : i64, scratch_operands = 0 : i64, tpu.core_type = #tpu.core_type<tc>} {
    %c0 = arith.constant 0 : index
    %c0_0 = arith.constant 0 : index
    %0 = vector.load %arg0[%c0, %c0_0] : memref<16x8xf32, #tpu.memory_space<vmem>>, vector<16x8xf32>
    %c0_1 = arith.constant 0 : index
    %c0_2 = arith.constant 0 : index
    %1 = vector.load %arg1[%c0_1, %c0_2] : memref<8x160xf32, #tpu.memory_space<vmem>>, vector<8x160xf32>
    %cst = arith.constant dense<0.000000e+00> : vector<16x160xf32>
    %2 = tpu.matmul %0, %1, %cst {dimension_numbers = #tpu.dot_dimension_numbers<[1], [0], [0], [1], [0, 0, 1, 1], [], []>} : vector<16x8xf32>, vector<8x160xf32>, vector<16x160xf32> -> vector<16x160xf32>
    %c0_3 = arith.constant 0 : index
    %c0_4 = arith.constant 0 : index
    %c0_5 = arith.constant 0 : index
    %3 = vector.load %arg4[%c0_3, %c0_4, %c0_5] : memref<2x1x160xf32, #tpu.memory_space<vmem>>, vector<1x1x160xf32>
    %4 = vector.shape_cast %3 : vector<1x1x160xf32> to vector<1x160xf32>
    %5 = vector.broadcast %4 : vector<1x160xf32> to vector<16x160xf32>
    %6 = arith.addf %2, %5 : vector<16x160xf32>
    %cst_6 = arith.constant 0.000000e+00 : f32
    %7 = vector.broadcast %cst_6 : f32 to vector<16x160xf32>
    %8 = arith.maximumf %6, %7 : vector<16x160xf32>
    %c0_7 = arith.constant 0 : index
    %c0_8 = arith.constant 0 : index
    %c0_9 = arith.constant 0 : index
    %9 = vector.load %arg2[%c0_7, %c0_8, %c0_9] : memref<1x160x160xf32, #tpu.memory_space<vmem>>, vector<1x160x160xf32>
    %10 = vector.shape_cast %9 : vector<1x160x160xf32> to vector<160x160xf32>
    %cst_10 = arith.constant dense<0.000000e+00> : vector<16x160xf32>
    %11 = tpu.matmul %8, %10, %cst_10 {dimension_numbers = #tpu.dot_dimension_numbers<[1], [0], [0], [1], [0, 0, 1, 1], [], []>} : vector<16x160xf32>, vector<160x160xf32>, vector<16x160xf32> -> vector<16x160xf32>
    %c1 = arith.constant 1 : index
    %c0_11 = arith.constant 0 : index
    %c0_12 = arith.constant 0 : index
    %12 = vector.load %arg4[%c1, %c0_11, %c0_12] : memref<2x1x160xf32, #tpu.memory_space<vmem>>, vector<1x1x160xf32>
    %13 = vector.shape_cast %12 : vector<1x1x160xf32> to vector<1x160xf32>
    %14 = vector.broadcast %13 : vector<1x160xf32> to vector<16x160xf32>
    %15 = arith.addf %11, %14 : vector<16x160xf32>
    %cst_13 = arith.constant 0.000000e+00 : f32
    %16 = vector.broadcast %cst_13 : f32 to vector<16x160xf32>
    %17 = arith.maximumf %15, %16 : vector<16x160xf32>
    %c0_14 = arith.constant 0 : index
    %c0_15 = arith.constant 0 : index
    %18 = vector.load %arg3[%c0_14, %c0_15] : memref<160x128xf32, #tpu.memory_space<vmem>>, vector<160x128xf32>
    %cst_16 = arith.constant dense<0.000000e+00> : vector<16x128xf32>
    %19 = tpu.matmul %17, %18, %cst_16 {dimension_numbers = #tpu.dot_dimension_numbers<[1], [0], [0], [1], [0, 0, 1, 1], [], []>} : vector<16x160xf32>, vector<160x128xf32>, vector<16x128xf32> -> vector<16x128xf32>
    %c0_17 = arith.constant 0 : index
    %c0_18 = arith.constant 0 : index
    %c0_19 = arith.constant 0 : index
    %20 = vector.load %arg5[%c0_17, %c0_18, %c0_19] : memref<3x1x128xf32, #tpu.memory_space<vmem>>, vector<1x1x128xf32>
    %21 = vector.shape_cast %20 : vector<1x1x128xf32> to vector<1x128xf32>
    %22 = vector.broadcast %21 : vector<1x128xf32> to vector<16x128xf32>
    %23 = arith.addf %19, %22 : vector<16x128xf32>
    %c1_20 = arith.constant 1 : index
    %c0_21 = arith.constant 0 : index
    %c0_22 = arith.constant 0 : index
    %24 = vector.load %arg5[%c1_20, %c0_21, %c0_22] : memref<3x1x128xf32, #tpu.memory_space<vmem>>, vector<1x1x128xf32>
    %25 = vector.shape_cast %24 : vector<1x1x128xf32> to vector<1x128xf32>
    %c2 = arith.constant 2 : index
    %c0_23 = arith.constant 0 : index
    %c0_24 = arith.constant 0 : index
    %26 = vector.load %arg5[%c2, %c0_23, %c0_24] : memref<3x1x128xf32, #tpu.memory_space<vmem>>, vector<1x1x128xf32>
    %27 = vector.shape_cast %26 : vector<1x1x128xf32> to vector<1x128xf32>
    %cst_25 = arith.constant 5.000000e-01 : f32
    %28 = vector.broadcast %cst_25 : f32 to vector<1x128xf32>
    %29 = arith.cmpf ogt, %27, %28 : vector<1x128xf32>
    %cst_26 = arith.constant 0xFF800000 : f32
    %30 = vector.shape_cast %29 : vector<1x128xi1> to vector<1x128xi1>
    %31 = vector.broadcast %30 : vector<1x128xi1> to vector<16x128xi1>
    %32 = vector.broadcast %cst_26 : f32 to vector<16x128xf32>
    %33 = arith.select %31, %23, %32 : vector<16x128xi1>, vector<16x128xf32>
    %cst_27 = arith.constant dense<0xFF800000> : vector<16xf32>
    %34 = vector.multi_reduction <maximumf>, %33, %cst_27 [1] : vector<16x128xf32> to vector<16xf32>
    %35 = vector.shape_cast %34 : vector<16xf32> to vector<16x1xf32>
    %36 = vector.broadcast %35 : vector<16x1xf32> to vector<16x128xf32>
    %37 = arith.subf %33, %36 : vector<16x128xf32>
    %38 = math.exp %37 : vector<16x128xf32>
    %cst_28 = arith.constant dense<0.000000e+00> : vector<16xf32>
    %39 = vector.multi_reduction <add>, %38, %cst_28 [1] : vector<16x128xf32> to vector<16xf32>
    %40 = vector.shape_cast %39 : vector<16xf32> to vector<16x1xf32>
    %41 = math.log %40 : vector<16x1xf32>
    %42 = vector.broadcast %41 : vector<16x1xf32> to vector<16x128xf32>
    %43 = arith.subf %37, %42 : vector<16x128xf32>
    %cst_29 = arith.constant 0.53974241 : f32
    %44 = vector.broadcast %cst_29 : f32 to vector<16x128xf32>
    %45 = arith.addf %23, %44 : vector<16x128xf32>
    %cst_30 = arith.constant 0.000000e+00 : f32
    %46 = vector.broadcast %cst_30 : f32 to vector<16x128xf32>
    %47 = arith.maximumf %45, %46 : vector<16x128xf32>
    %48 = math.absf %45 : vector<16x128xf32>
    %cst_31 = arith.constant 0.000000e+00 : f32
    %49 = vector.broadcast %cst_31 : f32 to vector<16x128xf32>
    %50 = arith.subf %49, %48 : vector<16x128xf32>
    %51 = math.exp %50 : vector<16x128xf32>
    %52 = math.log1p %51 : vector<16x128xf32>
    %53 = arith.addf %47, %52 : vector<16x128xf32>
    %cst_32 = arith.constant 5.000000e-01 : f32
    %54 = vector.broadcast %cst_32 : f32 to vector<1x128xf32>
    %55 = arith.cmpf ogt, %25, %54 : vector<1x128xf32>
    %cst_33 = arith.constant 1.000000e-03 : f32
    %56 = vector.broadcast %cst_33 : f32 to vector<16x128xf32>
    %57 = arith.addf %53, %56 : vector<16x128xf32>
    %58 = vector.shape_cast %55 : vector<1x128xi1> to vector<1x128xi1>
    %59 = vector.broadcast %58 : vector<1x128xi1> to vector<16x128xi1>
    %60 = arith.select %59, %57, %23 : vector<16x128xi1>, vector<16x128xf32>
    %cst_34 = arith.constant 5.000000e-01 : f32
    %61 = vector.broadcast %cst_34 : f32 to vector<1x128xf32>
    %62 = arith.cmpf ogt, %27, %61 : vector<1x128xf32>
    %63 = vector.shape_cast %62 : vector<1x128xi1> to vector<1x128xi1>
    %64 = vector.broadcast %63 : vector<1x128xi1> to vector<16x128xi1>
    %65 = arith.select %64, %43, %60 : vector<16x128xi1>, vector<16x128xf32>
    %c0_35 = arith.constant 0 : index
    %c0_36 = arith.constant 0 : index
    %66 = vector.load %arg6[%c0_35, %c0_36] : memref<16x128xf32, #tpu.memory_space<vmem>>, vector<16x128xf32>
    tpu.vector_store %arg6[%c0_35, %c0_36], %65 {strides = array<i32>} : memref<16x128xf32, #tpu.memory_space<vmem>>, vector<16x128xf32>,
    return
  }
}

</mosaic_0001>

<bundles_post_ra>
// kernel: forward.1
= control target key start
LH: loop header
LB: loop body
LE: loop exit
PB: predicated region body
PF: predicated region fallthrough
CT: control target
= control target key end

     0   :  { %11 = vsyncpa [#allocation3], 0  ;;  %s796_s0 = inlined_call_operand.vmem [shape: f32[16,8], index: 0, kind: input, shape index: {}]   ;;  %s797_s1 = inlined_call_operand.vmem [shape: f32[8,160], index: 1, kind: input, shape index: {}]   ;;  %s798_s2 = inlined_call_operand.hbm [shape: f32[1,160,160], index: 2, kind: input, shape index: {}]   ;;  %s799_s3 = inlined_call_operand.hbm [shape: f32[160,128], index: 3, kind: input, shape index: {}]   ;;  %s800_s4 = inlined_call_operand.vmem [shape: f32[2,1,160], index: 4, kind: input, shape index: {}]   ;;  %s801_s5 = inlined_call_operand.vmem [shape: f32[3,1,128], index: 5, kind: input, shape index: {}]   ;;  %s802_s6 = inlined_call_operand.vmem [shape: f32[16,128], index: 6, kind: output, shape index: {}]  }
   0x1   :  { %12 = vsyncpa [#allocation5], 0  ;;  %s643_s21 = smov [#allocation2]   ;;  %s595_s25 = scalar_lea.hbm %s798_s2, 5120 }
   0x2   :  { %s22_s22 = sshll.u32 %s643_s21, 4  ;;  %p596_p0 = scmp.ne.s32.totalorder %s798_s2, %s595_s25  ;;  %s23_s22 = int_to_ptr.vmem [resolvable:$true] %s22_s22 }
   0x3   :  { %p599_p1 = scmp.lt.u32.totalorder %s595_s25, %s798_s2 }
   0x5   :  { %p601_p2 = pnand %p599_p1, %p596_p0 }
   0x7   :  { %604 = shalt.err (!%p601_p2)
}
   0x8   :  { %s605_s30 = scalar_lea.vmem %s23_s22, 5120  ;;  %p610_p4 = scmp.lt.s32.totalorder %s23_s22, %s23_s22 }
   0x9   :  { %p606_p3 = scmp.ne.s32.totalorder %s23_s22, %s605_s30  ;;  %p611_p5 = scmp.lt.s32.totalorder %s605_s30, %s605_s30 }
   0xb   :  { %p612_p6 = por %p611_p5, %p610_p4 }
   0xd   :  { %p613_p7 = pnand %p612_p6, %p606_p3 }
   0xf   :  { %616 = shalt.err (!%p613_p7)
}
  0x10   :  { %s644_s7 = smov 256   ;;  %s645_s8 = smov 16  }
  0x11   :  { %28 = dma.hbm_to_vmem [thread:$0]  %s798_s2, 5120, %s23_s22, [#allocation3], %s644_s7, %s644_s7, %s645_s8  }
  0x12   :  { %s646_s11 = smov [#allocation4]   ;;  %s617_s15 = scalar_lea.hbm %s799_s3, 2560 }
  0x13   :  { %s34_s12 = sshll.u32 %s646_s11, 4  ;;  %p618_p8 = scmp.ne.s32.totalorder %s799_s3, %s617_s15  ;;  %s35_s12 = int_to_ptr.vmem [resolvable:$true] %s34_s12 }
  0x14   :  { %p621_p9 = scmp.lt.u32.totalorder %s617_s15, %s799_s3 }
  0x16   :  { %p623_p10 = pnand %p621_p9, %p618_p8 }
  0x18   :  { %626 = shalt.err (!%p623_p10)
}
  0x19   :  { %s627_s20 = scalar_lea.vmem %s35_s12, 2560  ;;  %p632_p12 = scmp.lt.s32.totalorder %s35_s12, %s35_s12 }
  0x1a   :  { %p628_p11 = scmp.ne.s32.totalorder %s35_s12, %s627_s20  ;;  %p633_p13 = scmp.lt.s32.totalorder %s627_s20, %s627_s20 }
  0x1c   :  { %p634_p0 = por %p633_p13, %p632_p12 }
  0x1e   :  { %p635_p1 = pnand %p634_p0, %p628_p11 }
  0x20   :  { %638 = shalt.err (!%p635_p1)
}
  0x21   :  { %s647_s2 = smov 128   ;;  %s648_s21 = smov 8  }
  0x22   :  { %40 = dma.hbm_to_vmem [thread:$0]  %s799_s3, 2560, %s35_s12, [#allocation5], %s647_s2, %s647_s2, %s648_s21  }
  0x23   :  { %639 = dma.done.wait [#allocation3], 5120  }
  0x24   :  { %640 = vsyncadd [#allocation3], 4294962176 }
  0x25   :  { %641 = dma.done.wait [#allocation5], 2560  }
  0x26   :  { %642 = vsyncadd [#allocation5], 4294964736  ;;  %v649_v0 = vmov 0.0   ;;  %v54_v1 = vld [vmem:[%s797_s1 + $0x8] sm:$0xff]  ;;  %v53_v2 = vld [vmem:[%s797_s1] sm:$0xff]  ;;  %vm67_vm0 = vcmask 64512  }
  0x27   :  { %138 = vmatprep.mubr.f32.mxu0 %v649_v0  ;;  %v51_v3 = vld [vmem:[%s796_s0] sm:$0xff]  ;;  %74 = vmatprep.subr.mxu0 %v54_v1  ;;  %v156_v4 = vld [vmem:[#allocation2 + $0x8] sm:$0xff]  ;;  %v158_v5 = vld [vmem:[#allocation2 + $0x18] sm:$0xff]  ;;  %vm208_vm1 = vcmask 261120  }
  0x28   :  { %75 = vmatpush1.msra.mxu0 %v53_v2  ;;  %v500_v6 = vpack.c.bf16 %v158_v5, %v156_v4  ;;  %v155_v7 = vld [vmem:[#allocation2] sm:$0xff]  ;;  %v157_v8 = vld [vmem:[#allocation2 + $0x10] sm:$0xff]  ;;  %v160_v9 = vld [vmem:[#allocation2 + $0x28] sm:$0xff]  ;;  %v650_v4 = vmov 0.0|0.0  }
  0x29   :  { %490 = vmatmul.mubr.msk.f32.vlgmr.msra.gmra.mrb[0].mxu0 %vm67_vm0, %v51_v3  ;;  %v502_v10 = vpack.c.bf16 %v157_v8, %v155_v7  ;;  %v162_v11 = vld [vmem:[#allocation2 + $0x38] sm:$0xff]  ;;  %v159_v12 = vld [vmem:[#allocation2 + $0x20] sm:$0xff]  ;;  %v161_v13 = vld [vmem:[#allocation2 + $0x30] sm:$0xff]  ;;  %540 = vmatprep.subr.bf16.mxu0 %v650_v4 }
  0x2a   :  { %144 = vmatprep.mubr.f32.mxu0 %v649_v0  ;;  %v52_v14 = vld [vmem:[%s796_s0 + $0x8] sm:$0xff]  ;;  %501 = vmatprep.subr.bf16.mxu1 %v500_v6  ;;  %v504_v15 = vpack.c.bf16 %v162_v11, %v160_v9  ;;  %v166_v17 = vld [vmem:[#allocation2 + $0x58] sm:$0xff]  ;;  %v506_v18 = vpack.c.bf16 %v161_v13, %v159_v12  ;;  %v163_v20 = vld [vmem:[#allocation2 + $0x40] sm:$0xff] }
  0x2b   :  { %v164_v16 = vld [vmem:[#allocation2 + $0x48] sm:$0xff]  ;;  %503 = vmatpush1.bf16.msra.mxu1 %v502_v10  ;;  %v165_v21 = vld [vmem:[#allocation2 + $0x50] sm:$0xff]  ;;  %v170_v23 = vld [vmem:[#allocation2 + $0x78] sm:$0xff] }
  0x2c   :  { %505 = vmatprep.subr.bf16.mxu1 %v504_v15  ;;  %v508_v19 = vpack.c.bf16 %v166_v17, %v164_v16  ;;  %v168_v22 = vld [vmem:[#allocation2 + $0x68] sm:$0xff]  ;;  %v510_v24 = vpack.c.bf16 %v165_v21, %v163_v20  ;;  %v167_v26 = vld [vmem:[#allocation2 + $0x60] sm:$0xff]  ;;  %v169_v27 = vld [vmem:[#allocation2 + $0x70] sm:$0xff] }
  0x2d   :  { %491 = vmatmul.mubr.msk.f32.gmra.mrb[2].mxu0 %vm67_vm0, %v52_v14  ;;  %v512_v25 = vpack.c.bf16 %v170_v23, %v168_v22  ;;  %v172_v28 = vld [vmem:[#allocation2 + $0x88] sm:$0xff]  ;;  %v174_v29 = vld [vmem:[#allocation2 + $0x98] sm:$0xff]  ;;  %v514_v30 = vpack.c.bf16 %v169_v27, %v167_v26  ;;  %v171_v32 = vld [vmem:[#allocation2 + $0x80] sm:$0xff]  ;;  %v57_v26 = vlaneseq }
  0x2e   :  { %v516_v31 = vpack.c.bf16 %v174_v29, %v172_v28  ;;  %v173_v33 = vld [vmem:[#allocation2 + $0x90] sm:$0xff]  ;;  %v176_v34 = vld [vmem:[#allocation2 + $0xa8] sm:$0xff]  ;;  %v178_v35 = vld [vmem:[#allocation2 + $0xb8] sm:$0xff] }
  0x2f   :  { %507 = vmatpush1.bf16.msra.mxu1 %v506_v18  ;;  %v518_v36 = vpack.c.bf16 %v173_v33, %v171_v32  ;;  %v520_v37 = vpack.c.bf16 %v178_v35, %v176_v34  ;;  %v175_v38 = vld [vmem:[#allocation2 + $0xa0] sm:$0xff]  ;;  %v177_v39 = vld [vmem:[#allocation2 + $0xb0] sm:$0xff]  ;;  %v180_v40 = vld [vmem:[#allocation2 + $0xc8] sm:$0xff]  ;;  %v58_v27 = vshrl.u32 %v57_v26, 7 }
  0x30   :  { %509 = vmatprep.subr.bf16.mxu1 %v508_v19  ;;  %v182_v41 = vld [vmem:[#allocation2 + $0xd8] sm:$0xff]  ;;  %v522_v42 = vpack.c.bf16 %v177_v39, %v175_v38  ;;  %v179_v44 = vld [vmem:[#allocation2 + $0xc0] sm:$0xff]  ;;  %v181_v45 = vld [vmem:[#allocation2 + $0xd0] sm:$0xff] }
  0x31   :  { %v524_v43 = vpack.c.bf16 %v182_v41, %v180_v40  ;;  %v184_v46 = vld [vmem:[#allocation2 + $0xe8] sm:$0xff]  ;;  %v186_v47 = vld [vmem:[#allocation2 + $0xf8] sm:$0xff]  ;;  %v526_v48 = vpack.c.bf16 %v181_v45, %v179_v44  ;;  %v183_v50 = vld [vmem:[#allocation2 + $0xe0] sm:$0xff]  ;;  %v734_v28 = vsub.s32 0, %v58_v27 }
  0x32   :  { %v528_v49 = vpack.c.bf16 %v186_v47, %v184_v46  ;;  %v185_v51 = vld [vmem:[#allocation2 + $0xf0] sm:$0xff]  ;;  %v188_v52 = vld [vmem:[#allocation2 + $0x108] sm:$0xff]  ;;  %v190_v53 = vld [vmem:[#allocation2 + $0x118] sm:$0xff] }
  0x33   :  { %511 = vmatpush1.bf16.msra.mxu1 %v510_v24  ;;  %v530_v54 = vpack.c.bf16 %v185_v51, %v183_v50  ;;  %v532_v55 = vpack.c.bf16 %v190_v53, %v188_v52  ;;  %v187_v56 = vld [vmem:[#allocation2 + $0x100] sm:$0xff]  ;;  %v189_v57 = vld [vmem:[#allocation2 + $0x110] sm:$0xff]  ;;  %v192_v59 = vld [vmem:[#allocation2 + $0x128] sm:$0xff] }
  0x34   :  { %513 = vmatprep.subr.bf16.mxu1 %v512_v25  ;;  %v534_v58 = vpack.c.bf16 %v189_v57, %v187_v56  ;;  %v194_v60 = vld [vmem:[#allocation2 + $0x138] sm:$0xff]  ;;  %v191_v62 = vld [vmem:[#allocation2 + $0x120] sm:$0xff]  ;;  %v193_v63 = vld [vmem:[#allocation2 + $0x130] sm:$0xff] }
  0x35   :  { %v536_v61 = vpack.c.bf16 %v194_v60, %v192_v59  ;;  %v538_v0 = vpack.c.bf16 %v193_v63, %v191_v62  ;;  %v296_v1 = vld [vmem:[#allocation4] sm:$0xff]  ;;  %v297_v2 = vld [vmem:[#allocation4 + $0x8] sm:$0xff]  ;;  %v298_v3 = vld [vmem:[#allocation4 + $0x10] sm:$0xff] }
  0x36   :  { %v541_v5 = vpack.c.bf16 %v297_v2, %v296_v1  ;;  %v299_v6 = vld [vmem:[#allocation4 + $0x18] sm:$0xff]  ;;  %v300_v8 = vld [vmem:[#allocation4 + $0x20] sm:$0xff]  ;;  %v301_v9 = vld [vmem:[#allocation4 + $0x28] sm:$0xff] }
  0x37   :  { %515 = vmatpush1.bf16.msra.mxu1 %v514_v30  ;;  %v544_v7 = vpack.c.bf16 %v299_v6, %v298_v3  ;;  %v547_v10 = vpack.c.bf16 %v301_v9, %v300_v8  ;;  %v302_v11 = vld [vmem:[#allocation4 + $0x30] sm:$0xff]  ;;  %v303_v12 = vld [vmem:[#allocation4 + $0x38] sm:$0xff]  ;;  %v304_v14 = vld [vmem:[#allocation4 + $0x40] sm:$0xff]  ;;  %v63_v30 = vsub.s32 1, %v58_v27  ;;  %v651_v3 = vmov 0  }
  0x38   :  { %517 = vmatprep.subr.bf16.mxu1 %v516_v31  ;;  %542 = vmatpush1.bf16.msra.mxu0 %v541_v5  ;;  %v550_v13 = vpack.c.bf16 %v303_v12, %v302_v11  ;;  %v305_v15 = vld [vmem:[#allocation4 + $0x48] sm:$0xff]  ;;  %v306_v17 = vld [vmem:[#allocation4 + $0x50] sm:$0xff]  ;;  %v307_v18 = vld [vmem:[#allocation4 + $0x58] sm:$0xff] }
  0x39   :  { %543 = vmatprep.subr.bf16.mxu0 %v650_v4  ;;  %v553_v16 = vpack.c.bf16 %v305_v15, %v304_v14  ;;  %v556_v19 = vpack.c.bf16 %v307_v18, %v306_v17  ;;  %v308_v20 = vld [vmem:[#allocation4 + $0x60] sm:$0xff]  ;;  %v309_v21 = vld [vmem:[#allocation4 + $0x68] sm:$0xff]  ;;  %v310_v23 = vld [vmem:[#allocation4 + $0x70] sm:$0xff] }
  0x3a   :  { %v559_v22 = vpack.c.bf16 %v309_v21, %v308_v20  ;;  %v311_v24 = vld [vmem:[#allocation4 + $0x78] sm:$0xff]  ;;  %v55_v29 = vld [vmem:[%s800_s4] sm:$0x3]  ;;  %v313_v46 = vld [vmem:[#allocation4 + $0x88] sm:$0xff] }
  0x3b   :  { %519 = vmatpush1.bf16.msra.mxu1 %v518_v36  ;;  %v562_v25 = vpack.c.bf16 %v311_v24, %v310_v23  ;;  %v60_v31 = vrot.slane %v55_v29, %v734_v28  ;;  %v64_v32 = vrot.slane %v55_v29, %v63_v30  ;;  %v312_v45 = vld [vmem:[#allocation4 + $0x80] sm:$0xff] }
  0x3c   :  { %521 = vmatprep.subr.bf16.mxu1 %v520_v37  ;;  %545 = vmatpush1.bf16.msra.mxu0 %v544_v7  ;;  %v565_v47 = vpack.c.bf16 %v313_v46, %v312_v45  ;;  %v492_v51 = vld [vmem:[%s800_s4 + $0x2] sm:$0x3]  ;;  %v495_v6 = vld [vmem:[%s801_s5] ss:$0 sm:$0xff]  ;;  %v498_v27 = vld [vmem:[%s801_s5 + $0x1] sm:$0x1] }
  0x3d   :  { %546 = vmatprep.subr.bf16.mxu0 %v650_v4  ;;  %v201_v52 = vrot.slane %v492_v51, %v734_v28  ;;  %v205_v53 = vrot.slane %v492_v51, %v63_v30  ;;  %v499_v2 = vld [vmem:[%s801_s5 + $0x2] sm:$0x1]  ;;  %vm469_vm4 = vcmp.gt.f32.partialorder %v498_v27, 0.5 }
  0x3e   :  { %vm408_vm2 = vcmp.gt.f32.partialorder %v499_v2, 0.5 }
  0x3f   :  { %523 = vmatpush1.bf16.msra.mxu1 %v522_v42 }
  0x40   :  { %525 = vmatprep.subr.bf16.mxu1 %v524_v43  ;;  %548 = vmatpush1.bf16.msra.mxu0 %v547_v10 }
  0x41   :  { %549 = vmatprep.subr.bf16.mxu0 %v650_v4 }
  0x43   :  { %527 = vmatpush1.bf16.msra.mxu1 %v526_v48  ;;  %v314_v48 = vld [vmem:[#allocation4 + $0x90] sm:$0xff] }
  0x44   :  { %529 = vmatprep.subr.bf16.mxu1 %v528_v49  ;;  %551 = vmatpush1.bf16.msra.mxu0 %v550_v13  ;;  %v315_v49 = vld [vmem:[#allocation4 + $0x98] sm:$0xff] }
  0x45   :  { %552 = vmatprep.subr.bf16.mxu0 %v650_v4  ;;  %v568_v50 = vpack.c.bf16 %v315_v49, %v314_v48 }
  0x47   :  { %531 = vmatpush1.bf16.msra.mxu1 %v530_v54 }
  0x48   :  { %533 = vmatprep.subr.bf16.mxu1 %v532_v55  ;;  %554 = vmatpush1.bf16.msra.mxu0 %v553_v16 }
  0x49   :  { %555 = vmatprep.subr.bf16.mxu0 %v650_v4 }
  0x4b   :  { %535 = vmatpush1.bf16.msra.mxu1 %v534_v58 }
  0x4c   :  { %537 = vmatprep.subr.bf16.mxu1 %v536_v61  ;;  %557 = vmatpush1.bf16.msra.mxu0 %v556_v19 }
  0x4d   :  { %558 = vmatprep.subr.bf16.mxu0 %v650_v4 }
  0x4f   :  { %539 = vmatpush1.bf16.msra.mxu1 %v538_v0 }
  0x50   :  { %560 = vmatpush1.bf16.msra.mxu0 %v559_v22 }
  0x51   :  { %561 = vmatprep.subr.bf16.mxu0 %v650_v4 }
  0x54   :  { %563 = vmatpush1.bf16.msra.mxu0 %v562_v25 }
  0x55   :  { %564 = vmatprep.subr.bf16.mxu0 %v650_v4 }
  0x58   :  { %566 = vmatpush1.bf16.msra.mxu0 %v565_v47 }
  0x59   :  { %567 = vmatprep.subr.bf16.mxu0 %v650_v4  ;;  %v409_v4 = vsel %vm408_vm2, 1, %v651_v3 }
  0x5a   :  { %v413_v5 = vrot.slane %v409_v4, %v734_v28 }
  0x5c   :  { %569 = vmatpush1.bf16.msra.mxu0 %v568_v50  ;;  %vm756_vm3 = vcmp.eq.s32.totalorder %v413_v5, 1 }
  0xfc   :  { %v140_v33 = vpop.f32.mrb[0].mxu0 }
  0xfd   :  { %v141_v34 = vadd.f32 %v140_v33, %v60_v31  ;;  %v142_v35 = vpop.f32.mrb[1].mxu0 }
  0xfe   :  { %v143_v36 = vadd.f32 %v142_v35, %v64_v32 }
  0xff   :  { %v151_v39 = vmax.f32 %v141_v34, 0.0  ;;  %v472_v34 = vsel %vm469_vm4, 1, %v651_v3 }
 0x100   :  { %v152_v37 = vmax.f32 %v143_v36, 0.0  ;;  %v146_v38 = vpop.f32.mrb[2].mxu0 }
 0x101   :  { %v147_v40 = vadd.f32 %v146_v38, %v60_v31  ;;  %v148_v41 = vpop.f32.mrb[3].mxu0  ;;  %v476_v38 = vrot.slane %v472_v34, %v734_v28 }
 0x102   :  { %v149_v42 = vadd.f32 %v148_v41, %v64_v32  ;;  %493 = vmatprep.mubr.msk.f32.mxu1 %vm208_vm1, %v152_v37 }
 0x103   :  { %280 = vmatmul.mubr.f32.vlgmr.msra.gmra.mrb[0].mxu1 %v151_v39  ;;  %v153_v44 = vmax.f32 %v147_v40, 0.0  ;;  %vm776_vm6 = vcmp.eq.s32.totalorder %v476_v38, 1 }
 0x104   :  { %v154_v43 = vmax.f32 %v149_v42, 0.0 }
 0x106   :  { %494 = vmatprep.mubr.msk.f32.mxu1 %vm208_vm1, %v154_v43 }
 0x107   :  { %286 = vmatmul.mubr.f32.gmra.mrb[2].mxu1 %v153_v44 }
 0x1d6   :  { %v281_v54 = vpop.f32.mrb[0].mxu1 }
 0x1d7   :  { %v282_v55 = vadd.f32 %v281_v54, %v201_v52  ;;  %v283_v56 = vpop.f32.mrb[1].mxu1 }
 0x1d8   :  { %v284_v57 = vadd.f32 %v283_v56, %v205_v53 }
 0x1d9   :  { %v292_v60 = vmax.f32 %v282_v55, 0.0 }
 0x1da   :  { %v293_v58 = vmax.f32 %v284_v57, 0.0  ;;  %v287_v59 = vpop.f32.mrb[2].mxu1 }
 0x1db   :  { %v288_v61 = vadd.f32 %v287_v59, %v201_v52  ;;  %v289_v62 = vpop.f32.mrb[3].mxu1 }
 0x1dc   :  { %v290_v63 = vadd.f32 %v289_v62, %v205_v53  ;;  %496 = vmatprep.mubr.msk.f32.mxu0 %vm208_vm1, %v293_v58 }
 0x1dd   :  { %394 = vmatmul.mubr.f32.vlgmr.msra.gmra.mrb[4].mxu0 %v292_v60  ;;  %v294_v1 = vmax.f32 %v288_v61, 0.0 }
 0x1de   :  { %v295_v0 = vmax.f32 %v290_v63, 0.0 }
 0x1e0   :  { %497 = vmatprep.mubr.msk.f32.mxu0 %vm208_vm1, %v295_v0 }
 0x1e1   :  { %399 = vmatmul.mubr.f32.gmra.mrb[6].mxu0 %v294_v1 }
 0x2b0   :  { %v395_v7 = vpop.f32.mrb[4].mxu0 }
 0x2b1   :  { %v760_v9 = vadd.f32 %v495_v6, %v395_v7  ;;  %v397_v10 = vpop.f32.mrb[5].mxu0 }
 0x2b3   :  { %v437_v11 = vadd.f32 0.5397424, %v760_v9  ;;  %v415_v12 = vsel %vm756_vm3, %v760_v9, -inf }
 0x2b4   :  { %v400_v13 = vpop.f32.mrb[6].mxu0  ;;  %417 = vmax.xlane.f32.xlu0 %v415_v12 }
 0x2b5   :  { %v441_v14 = vand.u32 2147483647, %v437_v11  ;;  %v766_v15 = vadd.f32 %v495_v6, %v400_v13  ;;  %v402_v16 = vpop.f32.mrb[7].mxu0  ;;  %v439_v40 = vmax.f32 %v437_v11, 0.0 }
 0x2b7   :  { %v443_v17 = vsub.f32 0.0, %v441_v14  ;;  %v438_v18 = vadd.f32 0.5397424, %v766_v15  ;;  %v416_v19 = vsel %vm756_vm3, %v766_v15, -inf }
 0x2b8   :  { %419 = vmax.xlane.f32.xlu0 %v416_v19 }
 0x2b9   :  { %v445_v20 = vmul.f32 1.442695, %v443_v17  ;;  %v442_v21 = vand.u32 2147483647, %v438_v18  ;;  %v440_v49 = vmax.f32 %v438_v18, 0.0 }
 0x2bb   :  { %579 = vpow2.f32 %v445_v20  ;;  %v444_v22 = vsub.f32 0.0, %v442_v21 }
 0x2bd   :  { %v447_v23 = vmul.f32 1.442695, %v444_v22 }
 0x2bf   :  { %581 = vpow2.f32 %v447_v23 }
 0x2c5   :  { %v580_v24 = vpop.eup %579 }
 0x2c6   :  { %v449_v25 = vadd.f32 1.0, %v580_v24  ;;  %v452_v30 = vmul.f32 -0.5, %v580_v24  ;;  %v455_v33 = vand.u32 2147483647, %v580_v24 }
 0x2c8   :  { %583 = vlog2.f32 %v449_v25  ;;  %v453_v31 = vadd.f32 1.0, %v452_v30  ;;  %vm456_vm5 = vcmp.lt.f32.partialorder %v455_v33, 0.0004427343 }
 0x2c9   :  { %v582_v26 = vpop.eup %581 }
 0x2ca   :  { %v458_v29 = vadd.f32 1.0, %v582_v26  ;;  %v461_v32 = vmul.f32 -0.5, %v582_v26  ;;  %v454_v37 = vmul.f32 %v580_v24, %v453_v31  ;;  %v464_v41 = vand.u32 2147483647, %v582_v26 }
 0x2cc   :  { %585 = vlog2.f32 %v458_v29  ;;  %v462_v39 = vadd.f32 1.0, %v461_v32  ;;  %vm465_vm7 = vcmp.lt.f32.partialorder %v464_v41, 0.0004427343 }
 0x2ce   :  { %v463_v47 = vmul.f32 %v582_v26, %v462_v39 }
 0x2d2   :  { %v584_v35 = vpop.eup %583 }
 0x2d3   :  { %v451_v36 = vmul.f32 0.6931472, %v584_v35 }
 0x2d5   :  { %v457_v42 = vsel %vm456_vm5, %v454_v37, %v451_v36 }
 0x2d6   :  { %v586_v43 = vpop.eup %585  ;;  %v467_v44 = vadd.f32 %v457_v42, %v439_v40 }
 0x2d7   :  { %v460_v46 = vmul.f32 0.6931472, %v586_v43 }
 0x2d8   :  { %v470_v48 = vadd.f32 0.001, %v467_v44 }
 0x2d9   :  { %v466_v50 = vsel %vm465_vm7, %v463_v47, %v460_v46 }
 0x2da   :  { %v478_v28 = vsel %vm776_vm6, %v470_v48, %v760_v9  ;;  %v468_v51 = vadd.f32 %v466_v50, %v440_v49 }
 0x2dc   :  { %v471_v52 = vadd.f32 0.001, %v468_v51 }
 0x2de   :  { %v479_v53 = vsel %vm776_vm6, %v471_v52, %v766_v15 }
 0x341   :  { %v418_v54 = vpop.xlane.xlu0 %417 }
 0x342   :  { %v421_v55 = vsub.f32 %v415_v12, %v418_v54 }
 0x344   :  { %v423_v56 = vmul.f32 1.442695, %v421_v55 }
 0x345   :  { %v420_v57 = vpop.xlane.xlu0 %419 }
 0x346   :  { %v422_v58 = vsub.f32 %v416_v19, %v420_v57  ;;  %587 = vpow2.f32 %v423_v56 }
 0x348   :  { %v425_v59 = vmul.f32 1.442695, %v422_v58 }
 0x34a   :  { %589 = vpow2.f32 %v425_v59 }
 0x350   :  { %v588_v60 = vpop.eup %587 }
 0x351   :  { %427 = vadd.xlane.f32.xlu1 %v588_v60 }
 0x354   :  { %v590_v61 = vpop.eup %589 }
 0x355   :  { %429 = vadd.xlane.f32.xlu1 %v590_v61 }
 0x3de   :  { %v428_v62 = vpop.xlane.xlu1 %427 }
 0x3df   :  { %591 = vlog2.f32 %v428_v62 }
 0x3e2   :  { %v430_v63 = vpop.xlane.xlu1 %429 }
 0x3e3   :  { %593 = vlog2.f32 %v430_v63 }
 0x3e9   :  { %v592_v0 = vpop.eup %591 }
 0x3ea   :  { %v432_v1 = vmul.f32 0.6931472, %v592_v0 }
 0x3ec   :  { %v435_v2 = vsub.f32 %v421_v55, %v432_v1 }
 0x3ed   :  { %v594_v3 = vpop.eup %593 }
 0x3ee   :  { %v480_v4 = vsel %vm756_vm3, %v435_v2, %v478_v28  ;;  %v434_v5 = vmul.f32 0.6931472, %v594_v3 }
 0x3ef   :  { %482 = vst [vmem:[%s802_s6] sm:$0xff] %v480_v4 }
 0x3f0   :  { %v436_v6 = vsub.f32 %v422_v58, %v434_v5 }
 0x3f2   :  { %v481_v7 = vsel %vm756_vm3, %v436_v6, %v479_v53 }
 0x3f3   :  { %483 = vst [vmem:[%s802_s6 + $0x8] sm:$0xff] %v481_v7 }
 0x3f4   :  { %488 = vsyncpa [#allocation3], 1 }
 0x3f5   :  { %489 = vsyncpa [#allocation5], 1 }

</bundles_post_ra>
